<compile_context>
chip_gen: v7x
topology: tpu7x:2x2x1
jax: 0.10.0
libtpu: 0.0.40
codegen_flags: <defaults>
</compile_context>

<pallas_src>
import jax
import jax.numpy as jnp
from jax import lax
from jax.experimental import pallas as pl
from jax.experimental.pallas import tpu as pltpu


def _round_up(x, m):
    return ((x + m - 1) // m) * m


def _conv_graph_embed_kernel(x_ref, w_ref, b_ref, o_ref):
    # x_ref: (TN, C)   w_ref: (H, C)   b_ref: (H, 1)   o_ref: (H, TN)
    y = lax.dot_general(
        w_ref[...], x_ref[...],
        dimension_numbers=(((1,), (1,)), ((), ())),   # (H,C) x (TN,C)^T -> (H,TN)
        preferred_element_type=jnp.float32,
    )
    o_ref[...] = (y + b_ref[...]).astype(o_ref.dtype)


def conv_graph_embedding(x, weight, bias, *, tn=None,
                         vmem_budget_bytes=12 * 1024 * 1024):
    """x: (B, N, C_in); weight: (H, C_in); bias: (H,). Returns (B, H, N)."""
    B, N, C = x.shape
    H = weight.shape[0]
    itemsize = jnp.dtype(x.dtype).itemsize

    # ---- Auto-size the N tile -------------------------------------------------
    # Big enough to amortize ~0.35 us per-grid-step overhead (1-2K columns),
    # small enough that double-buffered in+out tiles fit the VMEM budget.
    # Per output column: x tile contributes round_up(C,128) lanes (VMEM lane
    # padding of the narrow C dim), out tile contributes round_up(H,8) sublanes.
    if tn is None:
        lanes_c = _round_up(C, 128)
        sub_h = _round_up(H, 8)
        per_col = 2 * (lanes_c + sub_h) * itemsize       # double-buffered in + out
        tn = max(128, (vmem_budget_bytes // per_col) // 128 * 128)
        tn = min(tn, 2048)                               # amortization saturates here
        if B == 1 and N >= 256:
            # Keep >= 2 grid steps so the "parallel" axes shard across v7x's 2 TCs.
            tn = min(tn, _round_up(pl.cdiv(N, 2), 128))

    if N <= tn:
        TN = N                         # block == full dim: no (8,128) constraint, no mask
        n_tiles = 1
    else:
        TN = tn                        # multiple of 128 -> lane-dense unmasked stores
        n_tiles = pl.cdiv(N, TN)       # ragged tail masked by Pallas, no jnp.pad

    b2 = bias.reshape(H, 1)            # broadcasts over the lane (N) dim in-kernel

    cost = pl.CostEstimate(
        flops=2 * B * N * C * H,
        transcendentals=0,
        bytes_accessed=(x.size + weight.size + bias.size + B * H * N) * itemsize,
    )

    out = pl.pallas_call(
        _conv_graph_embed_kernel,
        out_shape=jax.ShapeDtypeStruct((B, H, N), x.dtype),
        grid_spec=pltpu.PrefetchScalarGridSpec(
            num_scalar_prefetch=0,
            grid=(B, n_tiles),
            in_specs=[
                pl.BlockSpec((None, TN, C), lambda b, j: (b, j, 0)),  # x tile (TN, C)
                pl.BlockSpec((H, C), lambda b, j: (0, 0)),            # weight, resident
                pl.BlockSpec((H, 1), lambda b, j: (0, 0)),            # bias, resident
            ],
            out_specs=pl.BlockSpec((None, H, TN), lambda b, j: (b, 0, j)),
        ),
        compiler_params=pltpu.CompilerParams(
            dimension_semantics=("parallel", "parallel")),
        cost_estimate=cost,
    )(x, weight, b2)

    return out                          # already (B, H, N) — no XLA transpose pass


def reference(x, weight, bias):
    # out[b, h, n] = sum_c W[h, c] * x[b, n, c] + bias[h]
    return jnp.einsum("hc,bnc->bhn", weight, x) + bias[None, :, None]


if __name__ == "__main__":
    key = jax.random.PRNGKey(0)
    k_x, k_w, k_b = jax.random.split(key, 3)

    B, N, C_in, H = 2, 16, 4, 32   # batch, graph nodes, input_size, hidden_size

    x = jax.random.normal(k_x, (B, N, C_in), dtype=jnp.float32)
    # Conv1d kernel_size=1 weight (H, C_in, 1) squeezed to (H, C_in)
    bound = 1.0 / (C_in ** 0.5)
    weight = jax.random.uniform(k_w, (H, C_in), minval=-bound, maxval=bound,
                                dtype=jnp.float32)
    bias = jax.random.uniform(k_b, (H,), minval=-bound, maxval=bound,
                              dtype=jnp.float32)

    out = jax.block_until_ready(conv_graph_embedding(x, weight, bias))

    ref = reference(x, weight, bias)
    assert out.shape == (B, H, N), out.shape
    assert jnp.allclose(out, ref, atol=1e-5, rtol=1e-5), "mismatch vs reference"

    print("KERNEL_OK")
</pallas_src>

<mosaic_0001>
module attributes {stable_mosaic.version = 11 : i64} {
  func.func @_conv_graph_embed_kernel(%arg0: i32, %arg1: i32, %arg2: memref<1x16x4xf32, #tpu.memory_space<vmem>>, %arg3: memref<32x4xf32, #tpu.memory_space<vmem>>, %arg4: memref<32x1xf32, #tpu.memory_space<vmem>>, %arg5: memref<1x32x16xf32, #tpu.memory_space<vmem>>) attributes {dimension_semantics = [#tpu.dimension_semantics<parallel>, #tpu.dimension_semantics<parallel>], iteration_bounds = array<i64: 2, 1>, scalar_prefetch = 0 : i64, scratch_operands = 0 : i64, tpu.core_type = #tpu.core_type<tc>, window_params = [{transform_indices = @transform_0, window_bounds = array<i64: 1, 16, 4>}, {pipeline_mode = #tpu.pipeline_mode<synchronous>, transform_indices = @transform_1, window_bounds = array<i64: 32, 4>}, {pipeline_mode = #tpu.pipeline_mode<synchronous>, transform_indices = @transform_2, window_bounds = array<i64: 32, 1>}, {transform_indices = @transform_3, window_bounds = array<i64: 1, 32, 16>}]} {
    %c0 = arith.constant 0 : index
    %c0_0 = arith.constant 0 : index
    %0 = vector.load %arg3[%c0, %c0_0] : memref<32x4xf32, #tpu.memory_space<vmem>>, vector<32x4xf32>
    %c0_1 = arith.constant 0 : index
    %c0_2 = arith.constant 0 : index
    %c0_3 = arith.constant 0 : index
    %1 = vector.load %arg2[%c0_1, %c0_2, %c0_3] : memref<1x16x4xf32, #tpu.memory_space<vmem>>, vector<1x16x4xf32>
    %2 = vector.shape_cast %1 : vector<1x16x4xf32> to vector<16x4xf32>
    %cst = arith.constant dense<0.000000e+00> : vector<32x16xf32>
    %3 = tpu.matmul %0, %2, %cst {dimension_numbers = #tpu.dot_dimension_numbers<[1], [1], [0], [0], [0, 0, 1, 0], [], []>} : vector<32x4xf32>, vector<16x4xf32>, vector<32x16xf32> -> vector<32x16xf32>
    %c0_4 = arith.constant 0 : index
    %c0_5 = arith.constant 0 : index
    %4 = vector.load %arg4[%c0_4, %c0_5] : memref<32x1xf32, #tpu.memory_space<vmem>>, vector<32x1xf32>
    %5 = vector.broadcast %4 : vector<32x1xf32> to vector<32x16xf32>
    %6 = arith.addf %3, %5 : vector<32x16xf32>
    %c0_6 = arith.constant 0 : index
    %c0_7 = arith.constant 0 : index
    %c0_8 = arith.constant 0 : index
    %7 = vector.load %arg5[%c0_6, %c0_7, %c0_8] : memref<1x32x16xf32, #tpu.memory_space<vmem>>, vector<1x32x16xf32>
    %8 = vector.shape_cast %7 : vector<1x32x16xf32> to vector<32x16xf32>
    %9 = vector.shape_cast %6 : vector<32x16xf32> to vector<1x32x16xf32>
    tpu.vector_store %arg5[%c0_6, %c0_7, %c0_8], %9 {strides = array<i32>} : memref<1x32x16xf32, #tpu.memory_space<vmem>>, vector<1x32x16xf32>,
    return
  }
  func.func @transform_0(%arg0: i32, %arg1: i32) -> (i32, i32, i32) {
    %c0_i32 = arith.constant 0 : i32
    %c0_i32_0 = arith.constant 0 : i32
    return %arg0, %arg1, %c0_i32 : i32, i32, i32
  }
  func.func @transform_1(%arg0: i32, %arg1: i32) -> (i32, i32) {
    %c0_i32 = arith.constant 0 : i32
    %c0_i32_0 = arith.constant 0 : i32
    %c0_i32_1 = arith.constant 0 : i32
    return %c0_i32, %c0_i32_0 : i32, i32
  }
  func.func @transform_2(%arg0: i32, %arg1: i32) -> (i32, i32) {
    %c0_i32 = arith.constant 0 : i32
    %c0_i32_0 = arith.constant 0 : i32
    %c0_i32_1 = arith.constant 0 : i32
    return %c0_i32, %c0_i32_0 : i32, i32
  }
  func.func @transform_3(%arg0: i32, %arg1: i32) -> (i32, i32, i32) {
    %c0_i32 = arith.constant 0 : i32
    %c0_i32_0 = arith.constant 0 : i32
    return %arg0, %c0_i32, %arg1 : i32, i32, i32
  }
}

</mosaic_0001>

<bundles_post_ra>
// kernel: tpu_custom_call.1
= control target key start
LH: loop header
LB: loop body
LE: loop exit
PB: predicated region body
PF: predicated region fallthrough
CT: control target
= control target key end

     0   :  { %s544_s12 = smov 0   ;;  %s546_s13 = smov 0   ;;  %s611_s0 = inlined_call_operand.vmem [shape: f32[2,16,4], index: 0, kind: input, shape index: {}]   ;;  %s612_s1 = inlined_call_operand.vmem [shape: f32[32,4], index: 1, kind: input, shape index: {}]   ;;  %s613_s2 = inlined_call_operand.vmem [shape: f32[32,1], index: 2, kind: input, shape index: {}]   ;;  %s614_s3 = inlined_call_operand.vmem [shape: f32[2,32,16], index: 3, kind: output, shape index: {}]  }
   0x1   :  { %s548_s14 = smov 0  }
   0x2 LB: > { %s25_s15 = sadd.s32 1, %s517_s13  ;;  %p433_p0 = scmp.ge.s32.totalorder %s521_s14, 1  ;;  %s521_s14 = sphi %s548_s14, %s13_s14   ;;  %s517_s13 = sphi %s546_s13, %s616_s13   ;;  %s513_s12 = sphi %s544_s12, %s615_s12  }
   0x3   : > { %p27_p1 = scmp.ge.s32.totalorder %s25_s15, 2  ;;  %p158_p2 = scmp.lt.s32.totalorder %s521_s14, 3 }
   0x5   : > { %s618_s15 = smov (%p27_p1, %s25_s15), 0  ;;  %p159_p3 = pnand %p433_p0, %p158_p2 }
   0x6   : > { %p190_p4 = scmp.lt.s32.totalorder (!%p159_p3), %s513_s12, 1  ;;  %vm237_vm0 = vcmask (!%p159_p3), 31744   ;;  %v207_v0 = vld [vmem:[%s612_s1] sm:$0xff] (!%p159_p3)  ;;  %v209_v1 = vld [vmem:[%s612_s1 + $0x10] sm:$0xff] (!%p159_p3)  ;;  %v523_v3 = vmov (!%p159_p3), 0   ;;  %v216_v5 = vld [vmem:[%s613_s2 + $0x18] sm:$0xff] (!%p159_p3) }
   0x7   : > { %162 = sbr.rel (%p159_p3) target bundleno = 244 (0xf4), region = 32  ;;  %458 = vmatprep.mubr.msk.f32.mxu0 (!%p159_p3), %vm237_vm0, %v207_v0  ;;  %461 = vmatprep.mubr.msk.f32.mxu1 (!%p159_p3), %vm237_vm0, %v209_v1  ;;  %v215_v2 = vld [vmem:[%s613_s2 + $0x10] sm:$0xff] (!%p159_p3)  ;;  %v213_v4 = vld [vmem:[%s613_s2] sm:$0xff] (!%p159_p3)  ;;  %v214_v6 = vld [vmem:[%s613_s2 + $0x8] sm:$0xff] (!%p159_p3)  ;;  %vm341_vm2 = vcmask (!%p159_p3), 130048  }
   0x8   : > { %498 = vset.pattern.permute.xlu1 (!%p159_p3), %v523_v3  ;;  %497 = vset.pattern.permute.xlu0 (!%p159_p3), %v523_v3  ;;  %vm465_vm1 = vmpackc.low (!%p159_p3), %vm237_vm0, %vm237_vm0  ;;  %v208_v10 = vld [vmem:[%s612_s1 + $0x8] sm:$0xff] (!%p159_p3)  ;;  %v210_v11 = vld [vmem:[%s612_s1 + $0x18] sm:$0xff] (!%p159_p3) }
   0x9   : > { %229 = vperm.xlu1 (!%p159_p3), %498, %v215_v2   ;;  %219 = vperm.xlu0 (!%p159_p3), %497, %v213_v4  }
   0xd   : > { %234 = vperm.xlu1 (!%p159_p3), %498, %v216_v5   ;;  %224 = vperm.xlu0 (!%p159_p3), %497, %v214_v6  }
   0xe   : > { %s620_s12 = smov (!%p190_p4, %s513_s12), 1 }
   0xf   : > { %s446_s24 = sshll.u32 %s620_s12, 4  ;;  %s447_s9 = sshll.u32 %s620_s12, 5 }
  0x10   : > { %s197_s4 = scalar_lea.vmem %s611_s0, %s446_s24  ;;  %s206_s16 = scalar_lea.vmem %s614_s3, %s447_s9 }
  0x11   : > { %v211_v7 = vld [vmem:[%s197_s4] sm:$0xff]  ;;  %v212_v8 = vld [vmem:[%s197_s4 + $0x8] sm:$0xff] }
  0x12   : > { %v464_v9 = vpack.c.bf16 %v212_v8, %v211_v7 }
  0x14   : > { %466 = vmatprep.subr.msk.bf16.mxu0 %vm465_vm1, %v464_v9  ;;  %470 = vmatprep.subr.msk.bf16.mxu1 %vm465_vm1, %v464_v9 }
  0x15   : > { %469 = vmatpush3.bf16.xpose.msk.msra.mxu0 %vm465_vm1, %v464_v9  ;;  %471 = vmatpush3.bf16.xpose.msk.msra.mxu1 %vm465_vm1, %v464_v9 }
  0x1c   : > { %459 = vmatmul.mubr.msk.f32.vlgmr.msra.gmra.mrb[0].mxu0 %vm237_vm0, %v208_v10  ;;  %462 = vmatmul.mubr.msk.f32.vlgmr.msra.gmra.mrb[0].mxu1 %vm237_vm0, %v210_v11 }
  0x88   : > { %v230_v12 = vpop.permute.xlu1 %229  ;;  %v220_v13 = vpop.permute.xlu0 %219 }
  0x8c   : > { %v235_v14 = vpop.permute.xlu1 %234  ;;  %v225_v15 = vpop.permute.xlu0 %224 }
  0xef   : > { %v460_v16 = vpop.f32.mrb[0].mxu0  ;;  %v463_v17 = vpop.f32.mrb[0].mxu1 }
  0xf0   : > { %v328_v18 = vadd.f32 %v460_v16, %v225_v15  ;;  %v338_v19 = vadd.f32 %v463_v17, %v235_v14  ;;  %v322_v20 = vpop.f32.mrb[1].mxu0  ;;  %v332_v21 = vpop.f32.mrb[1].mxu1 }
  0xf1   : > { %v323_v22 = vadd.f32 %v322_v20, %v220_v13  ;;  %v333_v23 = vadd.f32 %v332_v21, %v230_v12 }
  0xf2   : > { %343 = vst.msk [vmem:[%s206_s16 + $0x8] sm:$0xff] %vm341_vm2, %v328_v18  ;;  %345 = vst.msk [vmem:[%s206_s16 + $0x18] sm:$0xff] %vm341_vm2, %v338_v19 }
  0xf3   : > { %342 = vst.msk [vmem:[%s206_s16] sm:$0xff] %vm341_vm2, %v323_v22  ;;  %344 = vst.msk [vmem:[%s206_s16 + $0x10] sm:$0xff] %vm341_vm2, %v333_v23 }
  0xf4 PF: > { %s13_s14 = sadd.s32 1, %s521_s14   ;;  %s615_s12 = smov %s517_s13 }
  0xf5   : > { %p10_p5 = scmp.ge.s32.totalorder %s13_s14, 4   ;;  %s616_s13 = smov %s618_s15 }
  0xf7   :  { %12 = sbr.rel (!%p10_p5) target bundleno = 2 (0x2), region = 62 }

</bundles_post_ra>
